<compile_context>
chip_gen: v6e
topology: v6e:2x2x1
jax: 0.10.0
libtpu: 0.0.40
codegen_flags: <defaults>
</compile_context>

<pallas_src>
import functools

import jax
import jax.numpy as jnp
from jax.experimental import pallas as pl
from jax.experimental.pallas import tpu as pltpu

BN_EPS = 1e-5


def _round_up(x, m):
    return ((x + m - 1) // m) * m


def _pick_block_m(m_x, cin, cout, xbytes, ybytes, target=2048,
                  vmem_budget=20 * 2 ** 20):
    """Largest 128-multiple block whose pass-1 double-buffered working set stays
    under ~vmem_budget (v7x 64 MiB safe), capped at `target`, while keeping at
    least two blocks so both v7x TensorCores get work."""
    per_col = 3 * cin * xbytes + 2 * cout * ybytes + 4 * cout
    bm = min(target, vmem_budget // max(per_col, 1))
    bm = max(128, (bm // 128) * 128)
    if m_x > 128:
        bm = min(bm, _round_up((m_x + 1) // 2, 128))
    return bm


def _conv_stats_kernel(x_ref, halo_ref, w_ref, mask_ref, y_ref, stats_ref, *,
                       width, kh, kw):
    """Pass 1: conv via kh*kw shifted MXU matmuls + per-block BN partial sums.

    x_ref    : (Cin, TB)           bf16, transposed flattened (N,H,W) block
    halo_ref : (1, Cin, HALO_P)    bf16, columns immediately following the block
    w_ref    : (kh*kw, Cout, Cin)  bf16, transposed conv taps
    mask_ref : (1, TB)             bf16, 1.0 where the position is a real output
    y_ref    : (Cout, TB)          bf16 conv output (lane-dense along M)
    stats_ref: (1, Cout, 2)        f32 per-block per-channel [sum, sum_sq]
    """
    tb = x_ref.shape[1]
    cout = w_ref.shape[1]

    # Extend the block with its halo so every tap slice [off, off+tb) is static.
    # block_m is a multiple of 128 -> aligned lane concat.
    # TODO(synk): an overlapping-window (pl.Element) input BlockSpec would drop
    # this concat + the halo input; kept the proven two-input form.
    x_ext = jnp.concatenate([x_ref[...], halo_ref[0]], axis=1)   # (Cin, TB+HP)

    # TODO(synk): for small Cin the kh*kw taps could be folded into one
    # (Cout, kh*kw*Cin) @ (kh*kw*Cin, TB) dot; that needs an unaligned sublane
    # concat of the shifted slices, so the proven per-tap loop with f32 MXU
    # accumulation is kept (hidden under the HBM streams in practice).
    acc = jnp.zeros((cout, tb), jnp.float32)
    for t in range(kh * kw):
        i, j = divmod(t, kw)
        off = i * width + j                      # shift in flattened (h*W + w)
        acc = acc + jnp.dot(w_ref[t], x_ext[:, off:off + tb],
                            preferred_element_type=jnp.float32)

    # bf16 inter-pass activation; stats below use the f32 accumulator.
    y_ref[...] = acc.astype(y_ref.dtype)

    # Masked partial statistics (garbage / padded positions excluded).
    m = mask_ref[...].astype(jnp.float32)                            # (1, TB)
    ym = acc * m
    stats_ref[:, :, 0:1] = jnp.sum(ym, axis=1, keepdims=True)[None]        # sum
    stats_ref[:, :, 1:2] = jnp.sum(acc * ym, axis=1, keepdims=True)[None]  # sumsq


def _bn_relu_kernel(y_ref, scale_ref, shift_ref, o_ref):
    """Pass 2: folded BatchNorm affine (one FMA) + ReLU, lane-dense."""
    o_ref[...] = jnp.maximum(
        y_ref[...].astype(jnp.float32) * scale_ref[...] + shift_ref[...], 0.0)


def conv_block_forward(x_nchw, weight_oihw, gamma, beta, *,
                       block_m=None, matmul_dtype=jnp.bfloat16):
    """ConvBlock forward. x_nchw: (N,Cin,H,W) f32 -> (N,Cout,Ho,Wo) f32."""
    n, cin, h, w = x_nchw.shape
    cout, _, kh, kw = weight_oihw.shape
    ho, wo = h - kh + 1, w - kw + 1

    m_x = n * h * w
    halo_p = _round_up((kh - 1) * w + kw, 8)
    xbytes = jnp.dtype(matmul_dtype).itemsize

    if block_m is None:
        block_m = _pick_block_m(m_x, cin, cout, xbytes, xbytes)
    block_m = max(128, _round_up(block_m, 128))
    nb = pl.cdiv(m_x, block_m)
    m_pad = nb * block_m

    # ---- wrapper glue (layout only; no im2col, no lane transpose) -----------
    # (Cin, M) slab with M ordered as n*(H*W) + h*W + w: a leading-axis swap
    # that XLA lowers to a cheap strided copy.
    x2t = jnp.transpose(x_nchw.reshape(n, cin, h * w), (1, 0, 2)).reshape(cin, m_x)
    x2t = x2t.astype(matmul_dtype)

    if halo_p <= block_m:
        # Pad by a full block so halos fall out of a shifted strided slice
        # (no gather): halos[m] = x2t[:, (m+1)*block_m : (m+1)*block_m+halo_p].
        x2t = jnp.pad(x2t, ((0, 0), (0, m_pad + block_m - m_x)))
        x_main = x2t[:, :m_pad]
        halos = x2t[:, block_m:].reshape(cin, nb, block_m)[:, :, :halo_p]
        halos = jnp.transpose(halos, (1, 0, 2))                  # (NB, Cin, HP)
    else:
        # Rare fallback (very wide rows vs. tiny blocks): gather the halos.
        x2t = jnp.pad(x2t, ((0, 0), (0, m_pad + halo_p - m_x)))
        x_main = x2t[:, :m_pad]
        idx = (jnp.arange(nb)[:, None] + 1) * block_m + jnp.arange(halo_p)[None, :]
        halos = jnp.transpose(x2t[:, idx], (1, 0, 2))

    # Conv taps laid out for (Cout,Cin)@(Cin,TB): w_taps[i*kw+j] = W[:, :, i, j].
    w_taps = jnp.transpose(weight_oihw, (2, 3, 0, 1)).reshape(
        kh * kw, cout, cin).astype(matmul_dtype)

    # Validity mask over the flattened (N,H,W) grid, streamed as bf16 (2 B/pos).
    # TODO(synk): generating it in-kernel from program_id + iota needs vector
    # integer div/mod by a non-power-of-two width; kept as a narrow input.
    b_idx = jnp.arange(m_pad)
    valid = (b_idx < m_x) & (((b_idx // w) % h) < ho) & ((b_idx % w) < wo)
    mask = valid.astype(jnp.bfloat16).reshape(1, m_pad)

    # VMEM budget estimate (double-buffered ins/outs + accumulator + concat tmp).
    ws = (2 * cin * block_m * xbytes + 2 * cin * halo_p * xbytes
          + 2 * block_m * 2 + 2 * kh * kw * cout * cin * xbytes
          + 2 * cout * block_m * xbytes + 2 * cout * 2 * 4
          + cout * block_m * 4 + cin * (block_m + halo_p) * xbytes)
    vmem_limit = int(min(48 * 2 ** 20, max(32 * 2 ** 20, 2 * ws)))

    # ---- pass 1: conv + partial BN stats -------------------------------------
    kernel1 = functools.partial(_conv_stats_kernel, width=w, kh=kh, kw=kw)
    bytes1 = (x_main.size * xbytes + halos.size * xbytes + mask.size * 2
              + w_taps.size * xbytes + m_pad * cout * xbytes + nb * cout * 2 * 4)
    y_t, stats = pl.pallas_call(
        kernel1,
        out_shape=(jax.ShapeDtypeStruct((cout, m_pad), matmul_dtype),
                   jax.ShapeDtypeStruct((nb, cout, 2), jnp.float32)),
        grid=(nb,),
        in_specs=[
            pl.BlockSpec((cin, block_m), lambda m: (0, m)),
            pl.BlockSpec((1, cin, halo_p), lambda m: (m, 0, 0)),
            pl.BlockSpec((kh * kw, cout, cin), lambda m: (0, 0, 0)),
            pl.BlockSpec((1, block_m), lambda m: (0, m)),
        ],
        out_specs=(
            pl.BlockSpec((cout, block_m), lambda m: (0, m)),
            pl.BlockSpec((1, cout, 2), lambda m: (m, 0, 0)),
        ),
        compiler_params=pltpu.CompilerParams(
            dimension_semantics=("parallel",),
            vmem_limit_bytes=vmem_limit),
        cost_estimate=pl.CostEstimate(
            flops=2 * m_pad * (kh * kw * cin) * cout,
            transcendentals=0, bytes_accessed=bytes1),
    )(x_main, halos, w_taps, mask)

    # ---- glue: combine partial stats, fold BN into scale/shift (tiny) --------
    count = float(n * ho * wo)
    totals = jnp.sum(stats, axis=0)                        # (Cout, 2)
    mean = totals[:, 0] / count
    var = jnp.maximum(totals[:, 1] / count - mean * mean, 0.0)   # clamp >= 0
    inv_std = jax.lax.rsqrt(var + BN_EPS)
    scale_v = gamma.astype(jnp.float32) * inv_std
    shift_v = beta.astype(jnp.float32) - mean * scale_v
    scale = scale_v.reshape(cout, 1)
    shift = shift_v.reshape(cout, 1)

    # ---- pass 2: normalize + ReLU (lane-dense elementwise) -------------------
    bytes2 = m_pad * cout * (xbytes + 4) + 2 * cout * 4
    y_norm = pl.pallas_call(
        _bn_relu_kernel,
        out_shape=jax.ShapeDtypeStruct((cout, m_pad), jnp.float32),
        grid=(nb,),
        in_specs=[
            pl.BlockSpec((cout, block_m), lambda m: (0, m)),
            pl.BlockSpec((cout, 1), lambda m: (0, 0)),
            pl.BlockSpec((cout, 1), lambda m: (0, 0)),
        ],
        out_specs=pl.BlockSpec((cout, block_m), lambda m: (0, m)),
        compiler_params=pltpu.CompilerParams(
            dimension_semantics=("parallel",),
            vmem_limit_bytes=vmem_limit),
        cost_estimate=pl.CostEstimate(
            flops=3 * m_pad * cout, transcendentals=0, bytes_accessed=bytes2),
    )(y_t, scale, shift)

    # ---- final layout: (Cout, M) -> NCHW valid region -------------------------
    # TODO(synk): this crop+transpose is one extra XLA pass over the output; it
    # is kept because the module contract returns NCHW.
    y_full = y_norm[:, :m_x].reshape(cout, n, h, w)
    return jnp.transpose(y_full[:, :, :ho, :wo], (1, 0, 2, 3))


def _reference(x_nchw, weight_oihw, gamma, beta):
    """Pure-f32 ground-truth reference: valid conv, training-mode BN, ReLU."""
    y = jax.lax.conv_general_dilated(
        x_nchw, weight_oihw, window_strides=(1, 1), padding="VALID",
        dimension_numbers=("NCHW", "OIHW", "NCHW"))
    mean = jnp.mean(y, axis=(0, 2, 3), keepdims=True)
    var = jnp.mean((y - mean) ** 2, axis=(0, 2, 3), keepdims=True)
    y = (y - mean) * jax.lax.rsqrt(var + BN_EPS)
    y = y * gamma.reshape(1, -1, 1, 1) + beta.reshape(1, -1, 1, 1)
    return jnp.maximum(y, 0.0)


if __name__ == "__main__":
    key = jax.random.PRNGKey(0)
    kx, kw_, kg, kb = jax.random.split(key, 4)

    N, CIN, COUT, H, W, K = 2, 4, 8, 16, 16, 3

    x = jax.random.normal(kx, (N, CIN, H, W), dtype=jnp.float32)
    fan_in = CIN * K * K
    weight = jax.random.normal(kw_, (COUT, CIN, K, K), dtype=jnp.float32) * (
        (2.0 / fan_in) ** 0.5)
    # Non-trivial BN affine parameters to exercise the affine path.
    gamma = 1.0 + 0.1 * jax.random.normal(kg, (COUT,), dtype=jnp.float32)
    beta = 0.1 * jax.random.normal(kb, (COUT,), dtype=jnp.float32)

    # Auto block_m -> 256 lanes, nb=2 (exercises the pipelined grid).
    out = conv_block_forward(x, weight, gamma, beta)
    out = jax.block_until_ready(out)
    assert out.shape == (N, COUT, H - K + 1, W - K + 1), out.shape

    ref = jax.block_until_ready(_reference(x, weight, gamma, beta))
    # Kernel uses bf16 MXU operands and a bf16 inter-pass activation; compare
    # against the pure-f32 reference with a tolerance covering that budget
    # (typical max-abs error ~1e-2 on these shapes).
    err = float(jnp.max(jnp.abs(out - ref)))
    assert err < 6e-2, err

    print("KERNEL_OK")
</pallas_src>

<mosaic_0001>
module attributes {stable_mosaic.version = 11 : i64} {
  func.func @_conv_stats_kernel(%arg0: i32, %arg1: memref<4x256xbf16, #tpu.memory_space<vmem>>, %arg2: memref<1x4x40xbf16, #tpu.memory_space<vmem>>, %arg3: memref<9x8x4xbf16, #tpu.memory_space<vmem>>, %arg4: memref<1x256xbf16, #tpu.memory_space<vmem>>, %arg5: memref<8x256xbf16, #tpu.memory_space<vmem>>, %arg6: memref<1x8x2xf32, #tpu.memory_space<vmem>>) attributes {dimension_semantics = [#tpu.dimension_semantics<parallel>], iteration_bounds = array<i64: 2>, scalar_prefetch = 0 : i64, scratch_operands = 0 : i64, tpu.core_type = #tpu.core_type<tc>, window_params = [{transform_indices = @transform_0, window_bounds = array<i64: 4, 256>}, {transform_indices = @transform_1, window_bounds = array<i64: 1, 4, 40>}, {pipeline_mode = #tpu.pipeline_mode<synchronous>, transform_indices = @transform_2, window_bounds = array<i64: 9, 8, 4>}, {transform_indices = @transform_3, window_bounds = array<i64: 1, 256>}, {transform_indices = @transform_4, window_bounds = array<i64: 8, 256>}, {transform_indices = @transform_5, window_bounds = array<i64: 1, 8, 2>}]} {
    %c0 = arith.constant 0 : index
    %c0_0 = arith.constant 0 : index
    %0 = vector.load %arg1[%c0, %c0_0] : memref<4x256xbf16, #tpu.memory_space<vmem>>, vector<4x256xbf16>
    %c0_1 = arith.constant 0 : index
    %c0_2 = arith.constant 0 : index
    %c0_3 = arith.constant 0 : index
    %1 = vector.load %arg2[%c0_1, %c0_2, %c0_3] : memref<1x4x40xbf16, #tpu.memory_space<vmem>>, vector<1x4x40xbf16>
    %2 = vector.shape_cast %1 : vector<1x4x40xbf16> to vector<4x40xbf16>
    %3 = tpu.concatenate %0, %2 in 1 : vector<4x256xbf16>, vector<4x40xbf16> -> vector<4x296xbf16>
    %cst = arith.constant 0.000000e+00 : f32
    %4 = vector.broadcast %cst : f32 to vector<8x256xf32>
    %c0_4 = arith.constant 0 : index
    %c0_5 = arith.constant 0 : index
    %c0_6 = arith.constant 0 : index
    %5 = vector.load %arg3[%c0_4, %c0_5, %c0_6] : memref<9x8x4xbf16, #tpu.memory_space<vmem>>, vector<1x8x4xbf16>
    %6 = vector.shape_cast %5 : vector<1x8x4xbf16> to vector<8x4xbf16>
    %7 = vector.extract_strided_slice %3 {offsets = [0, 0], sizes = [4, 256], strides = [1, 1]} : vector<4x296xbf16> to vector<4x256xbf16>
    %cst_7 = arith.constant dense<0.000000e+00> : vector<8x256xf32>
    %8 = tpu.matmul %6, %7, %cst_7 {dimension_numbers = #tpu.dot_dimension_numbers<[1], [0], [0], [1], [0, 0, 1, 1], [], []>} : vector<8x4xbf16>, vector<4x256xbf16>, vector<8x256xf32> -> vector<8x256xf32>
    %9 = arith.addf %4, %8 : vector<8x256xf32>
    %c1 = arith.constant 1 : index
    %c0_8 = arith.constant 0 : index
    %c0_9 = arith.constant 0 : index
    %10 = vector.load %arg3[%c1, %c0_8, %c0_9] : memref<9x8x4xbf16, #tpu.memory_space<vmem>>, vector<1x8x4xbf16>
    %11 = vector.shape_cast %10 : vector<1x8x4xbf16> to vector<8x4xbf16>
    %12 = vector.extract_strided_slice %3 {offsets = [0, 1], sizes = [4, 256], strides = [1, 1]} : vector<4x296xbf16> to vector<4x256xbf16>
    %cst_10 = arith.constant dense<0.000000e+00> : vector<8x256xf32>
    %13 = tpu.matmul %11, %12, %cst_10 {dimension_numbers = #tpu.dot_dimension_numbers<[1], [0], [0], [1], [0, 0, 1, 1], [], []>} : vector<8x4xbf16>, vector<4x256xbf16>, vector<8x256xf32> -> vector<8x256xf32>
    %14 = arith.addf %9, %13 : vector<8x256xf32>
    %c2 = arith.constant 2 : index
    %c0_11 = arith.constant 0 : index
    %c0_12 = arith.constant 0 : index
    %15 = vector.load %arg3[%c2, %c0_11, %c0_12] : memref<9x8x4xbf16, #tpu.memory_space<vmem>>, vector<1x8x4xbf16>
    %16 = vector.shape_cast %15 : vector<1x8x4xbf16> to vector<8x4xbf16>
    %17 = vector.extract_strided_slice %3 {offsets = [0, 2], sizes = [4, 256], strides = [1, 1]} : vector<4x296xbf16> to vector<4x256xbf16>
    %cst_13 = arith.constant dense<0.000000e+00> : vector<8x256xf32>
    %18 = tpu.matmul %16, %17, %cst_13 {dimension_numbers = #tpu.dot_dimension_numbers<[1], [0], [0], [1], [0, 0, 1, 1], [], []>} : vector<8x4xbf16>, vector<4x256xbf16>, vector<8x256xf32> -> vector<8x256xf32>
    %19 = arith.addf %14, %18 : vector<8x256xf32>
    %c3 = arith.constant 3 : index
    %c0_14 = arith.constant 0 : index
    %c0_15 = arith.constant 0 : index
    %20 = vector.load %arg3[%c3, %c0_14, %c0_15] : memref<9x8x4xbf16, #tpu.memory_space<vmem>>, vector<1x8x4xbf16>
    %21 = vector.shape_cast %20 : vector<1x8x4xbf16> to vector<8x4xbf16>
    %22 = vector.extract_strided_slice %3 {offsets = [0, 16], sizes = [4, 256], strides = [1, 1]} : vector<4x296xbf16> to vector<4x256xbf16>
    %cst_16 = arith.constant dense<0.000000e+00> : vector<8x256xf32>
    %23 = tpu.matmul %21, %22, %cst_16 {dimension_numbers = #tpu.dot_dimension_numbers<[1], [0], [0], [1], [0, 0, 1, 1], [], []>} : vector<8x4xbf16>, vector<4x256xbf16>, vector<8x256xf32> -> vector<8x256xf32>
    %24 = arith.addf %19, %23 : vector<8x256xf32>
    %c4 = arith.constant 4 : index
    %c0_17 = arith.constant 0 : index
    %c0_18 = arith.constant 0 : index
    %25 = vector.load %arg3[%c4, %c0_17, %c0_18] : memref<9x8x4xbf16, #tpu.memory_space<vmem>>, vector<1x8x4xbf16>
    %26 = vector.shape_cast %25 : vector<1x8x4xbf16> to vector<8x4xbf16>
    %27 = vector.extract_strided_slice %3 {offsets = [0, 17], sizes = [4, 256], strides = [1, 1]} : vector<4x296xbf16> to vector<4x256xbf16>
    %cst_19 = arith.constant dense<0.000000e+00> : vector<8x256xf32>
    %28 = tpu.matmul %26, %27, %cst_19 {dimension_numbers = #tpu.dot_dimension_numbers<[1], [0], [0], [1], [0, 0, 1, 1], [], []>} : vector<8x4xbf16>, vector<4x256xbf16>, vector<8x256xf32> -> vector<8x256xf32>
    %29 = arith.addf %24, %28 : vector<8x256xf32>
    %c5 = arith.constant 5 : index
    %c0_20 = arith.constant 0 : index
    %c0_21 = arith.constant 0 : index
    %30 = vector.load %arg3[%c5, %c0_20, %c0_21] : memref<9x8x4xbf16, #tpu.memory_space<vmem>>, vector<1x8x4xbf16>
    %31 = vector.shape_cast %30 : vector<1x8x4xbf16> to vector<8x4xbf16>
    %32 = vector.extract_strided_slice %3 {offsets = [0, 18], sizes = [4, 256], strides = [1, 1]} : vector<4x296xbf16> to vector<4x256xbf16>
    %cst_22 = arith.constant dense<0.000000e+00> : vector<8x256xf32>
    %33 = tpu.matmul %31, %32, %cst_22 {dimension_numbers = #tpu.dot_dimension_numbers<[1], [0], [0], [1], [0, 0, 1, 1], [], []>} : vector<8x4xbf16>, vector<4x256xbf16>, vector<8x256xf32> -> vector<8x256xf32>
    %34 = arith.addf %29, %33 : vector<8x256xf32>
    %c6 = arith.constant 6 : index
    %c0_23 = arith.constant 0 : index
    %c0_24 = arith.constant 0 : index
    %35 = vector.load %arg3[%c6, %c0_23, %c0_24] : memref<9x8x4xbf16, #tpu.memory_space<vmem>>, vector<1x8x4xbf16>
    %36 = vector.shape_cast %35 : vector<1x8x4xbf16> to vector<8x4xbf16>
    %37 = vector.extract_strided_slice %3 {offsets = [0, 32], sizes = [4, 256], strides = [1, 1]} : vector<4x296xbf16> to vector<4x256xbf16>
    %cst_25 = arith.constant dense<0.000000e+00> : vector<8x256xf32>
    %38 = tpu.matmul %36, %37, %cst_25 {dimension_numbers = #tpu.dot_dimension_numbers<[1], [0], [0], [1], [0, 0, 1, 1], [], []>} : vector<8x4xbf16>, vector<4x256xbf16>, vector<8x256xf32> -> vector<8x256xf32>
    %39 = arith.addf %34, %38 : vector<8x256xf32>
    %c7 = arith.constant 7 : index
    %c0_26 = arith.constant 0 : index
    %c0_27 = arith.constant 0 : index
    %40 = vector.load %arg3[%c7, %c0_26, %c0_27] : memref<9x8x4xbf16, #tpu.memory_space<vmem>>, vector<1x8x4xbf16>
    %41 = vector.shape_cast %40 : vector<1x8x4xbf16> to vector<8x4xbf16>
    %42 = vector.extract_strided_slice %3 {offsets = [0, 33], sizes = [4, 256], strides = [1, 1]} : vector<4x296xbf16> to vector<4x256xbf16>
    %cst_28 = arith.constant dense<0.000000e+00> : vector<8x256xf32>
    %43 = tpu.matmul %41, %42, %cst_28 {dimension_numbers = #tpu.dot_dimension_numbers<[1], [0], [0], [1], [0, 0, 1, 1], [], []>} : vector<8x4xbf16>, vector<4x256xbf16>, vector<8x256xf32> -> vector<8x256xf32>
    %44 = arith.addf %39, %43 : vector<8x256xf32>
    %c8 = arith.constant 8 : index
    %c0_29 = arith.constant 0 : index
    %c0_30 = arith.constant 0 : index
    %45 = vector.load %arg3[%c8, %c0_29, %c0_30] : memref<9x8x4xbf16, #tpu.memory_space<vmem>>, vector<1x8x4xbf16>
    %46 = vector.shape_cast %45 : vector<1x8x4xbf16> to vector<8x4xbf16>
    %47 = vector.extract_strided_slice %3 {offsets = [0, 34], sizes = [4, 256], strides = [1, 1]} : vector<4x296xbf16> to vector<4x256xbf16>
    %cst_31 = arith.constant dense<0.000000e+00> : vector<8x256xf32>
    %48 = tpu.matmul %46, %47, %cst_31 {dimension_numbers = #tpu.dot_dimension_numbers<[1], [0], [0], [1], [0, 0, 1, 1], [], []>} : vector<8x4xbf16>, vector<4x256xbf16>, vector<8x256xf32> -> vector<8x256xf32>
    %49 = arith.addf %44, %48 : vector<8x256xf32>
    %50 = arith.truncf %49 : vector<8x256xf32> to vector<8x256xbf16>
    %c0_32 = arith.constant 0 : index
    %c0_33 = arith.constant 0 : index
    %51 = vector.load %arg5[%c0_32, %c0_33] : memref<8x256xbf16, #tpu.memory_space<vmem>>, vector<8x256xbf16>
    tpu.vector_store %arg5[%c0_32, %c0_33], %50 {strides = array<i32>} : memref<8x256xbf16, #tpu.memory_space<vmem>>, vector<8x256xbf16>,
    %c0_34 = arith.constant 0 : index
    %c0_35 = arith.constant 0 : index
    %52 = vector.load %arg4[%c0_34, %c0_35] : memref<1x256xbf16, #tpu.memory_space<vmem>>, vector<1x256xbf16>
    %53 = arith.extf %52 : vector<1x256xbf16> to vector<1x256xf32>
    %54 = vector.broadcast %53 : vector<1x256xf32> to vector<8x256xf32>
    %55 = arith.mulf %49, %54 : vector<8x256xf32>
    %cst_36 = arith.constant dense<0.000000e+00> : vector<8xf32>
    %56 = vector.multi_reduction <add>, %55, %cst_36 [1] : vector<8x256xf32> to vector<8xf32>
    %57 = vector.shape_cast %56 : vector<8xf32> to vector<8x1xf32>
    %58 = vector.shape_cast %57 : vector<8x1xf32> to vector<1x8x1xf32>
    %c0_37 = arith.constant 0 : index
    %c0_38 = arith.constant 0 : index
    %c0_39 = arith.constant 0 : index
    %59 = vector.load %arg6[%c0_37, %c0_38, %c0_39] : memref<1x8x2xf32, #tpu.memory_space<vmem>>, vector<1x8x1xf32>
    tpu.vector_store %arg6[%c0_37, %c0_38, %c0_39], %58 {strides = array<i32>} : memref<1x8x2xf32, #tpu.memory_space<vmem>>, vector<1x8x1xf32>,
    %60 = arith.mulf %49, %55 : vector<8x256xf32>
    %cst_40 = arith.constant dense<0.000000e+00> : vector<8xf32>
    %61 = vector.multi_reduction <add>, %60, %cst_40 [1] : vector<8x256xf32> to vector<8xf32>
    %62 = vector.shape_cast %61 : vector<8xf32> to vector<8x1xf32>
    %63 = vector.shape_cast %62 : vector<8x1xf32> to vector<1x8x1xf32>
    %c0_41 = arith.constant 0 : index
    %c0_42 = arith.constant 0 : index
    %c1_43 = arith.constant 1 : index
    %64 = vector.load %arg6[%c0_41, %c0_42, %c1_43] : memref<1x8x2xf32, #tpu.memory_space<vmem>>, vector<1x8x1xf32>
    tpu.vector_store %arg6[%c0_41, %c0_42, %c1_43], %63 {strides = array<i32>} : memref<1x8x2xf32, #tpu.memory_space<vmem>>, vector<1x8x1xf32>,
    return
  }
  func.func @transform_0(%arg0: i32) -> (i32, i32) {
    %c0_i32 = arith.constant 0 : i32
    %c0_i32_0 = arith.constant 0 : i32
    return %c0_i32, %arg0 : i32, i32
  }
  func.func @transform_1(%arg0: i32) -> (i32, i32, i32) {
    %c0_i32 = arith.constant 0 : i32
    %c0_i32_0 = arith.constant 0 : i32
    %c0_i32_1 = arith.constant 0 : i32
    return %arg0, %c0_i32, %c0_i32_0 : i32, i32, i32
  }
  func.func @transform_2(%arg0: i32) -> (i32, i32, i32) {
    %c0_i32 = arith.constant 0 : i32
    %c0_i32_0 = arith.constant 0 : i32
    %c0_i32_1 = arith.constant 0 : i32
    %c0_i32_2 = arith.constant 0 : i32
    return %c0_i32, %c0_i32_0, %c0_i32_1 : i32, i32, i32
  }
  func.func @transform_3(%arg0: i32) -> (i32, i32) {
    %c0_i32 = arith.constant 0 : i32
    %c0_i32_0 = arith.constant 0 : i32
    return %c0_i32, %arg0 : i32, i32
  }
  func.func @transform_4(%arg0: i32) -> (i32, i32) {
    %c0_i32 = arith.constant 0 : i32
    %c0_i32_0 = arith.constant 0 : i32
    return %c0_i32, %arg0 : i32, i32
  }
  func.func @transform_5(%arg0: i32) -> (i32, i32, i32) {
    %c0_i32 = arith.constant 0 : i32
    %c0_i32_0 = arith.constant 0 : i32
    %c0_i32_1 = arith.constant 0 : i32
    return %arg0, %c0_i32, %c0_i32_0 : i32, i32, i32
  }
}

</mosaic_0001>

<bundles_post_ra>
// kernel: tpu_custom_call.1
= control target key start
LH: loop header
LB: loop body
LE: loop exit
PB: predicated region body
PF: predicated region fallthrough
CT: control target
= control target key end

     0   :  { %11 = vsyncpa [#allocation3], 0  ;;  %s1378_s0 = inlined_call_operand.vmem [shape: bf16[4,512], index: 0, kind: input, shape index: {}]   ;;  %s1379_s1 = inlined_call_operand.vmem [shape: bf16[2,4,40], index: 1, kind: input, shape index: {}]   ;;  %s1380_s2 = inlined_call_operand.vmem [shape: bf16[9,8,4], index: 2, kind: input, shape index: {}]   ;;  %s1381_s3 = inlined_call_operand.vmem [shape: bf16[1,512], index: 3, kind: input, shape index: {}]   ;;  %s1382_s4 = inlined_call_operand.hbm [shape: bf16[8,512], index: 4, kind: output, shape index: {0}]   ;;  %s1383_s5 = inlined_call_operand.vmem [shape: f32[2,8,2], index: 5, kind: output, shape index: {1}]  }
   0x1   :  { %13 = vsyncpa [#allocation3 + $0x1], 0  ;;  %s1206_s18 = smov 0   ;;  %s1208_s19 = smov 0  }
   0x2   :  { %s1210_s20 = smov 0   ;;  %s1212_s21 = smov 0  }
   0x3 LB: > { %s1227_s22 = sadd.s32 4294967295, %s1164_s21   ;;  %s1011_s23 = sadd.s32 4294967294, %s1164_s21   ;;  %s1164_s21 = sphi %s1212_s21, %s1389_s21   ;;  %s1160_s20 = sphi %s1210_s20, %s1388_s20   ;;  %s1156_s19 = sphi %s1208_s19, %s1387_s19   ;;  %s1152_s18 = sphi %s1206_s18, %s1386_s18  }
   0x4   : > { %s1231_s24 = sadd.s32 1, %s1164_s21   ;;  %s125_s25 = sadd.s32 1, %s1160_s20 }
   0x5   : > { %s122_s26 = ssub.s32 %s1164_s21, %s1231_s24  ;;  %p135_p0 = scmp.ne.s32.totalorder %s1160_s20, %s1156_s19 }
   0x6   : > { %p123_p1 = scmp.eq.s32.totalorder %s122_s26, 0  ;;  %p136_p2 = scmp.eq.s32.totalorder %s1227_s22, 1 }
   0x7   : > { %p141_p3 = scmp.ne.s32.totalorder %s1156_s19, %s1152_s18  ;;  %p142_p4 = scmp.eq.s32.totalorder %s1011_s23, 1 }
   0x8   : > { %s1242_s27 = scalar_select %p123_p1, %s1160_s20, %s125_s25  }
   0x9   : > { %p1244_p5 = por %p136_p2, %p135_p0  ;;  %p1248_p6 = por %p142_p4, %p141_p3 }
   0xa   : > { %p1014_p7 = scmp.ge.s32.totalorder %s1164_s21, 1  ;;  %p213_p8 = scmp.lt.s32.totalorder %s1164_s21, 3 }
   0xc   : > { %p214_p9 = pnand %p1014_p7, %p213_p8 }
   0xd   : > { %p259_p10 = scmp.lt.s32.totalorder (!%p214_p9), %s1227_s22, 1  ;;  %s1016_s30 = sshll.u32 (!%p214_p9), %s1227_s22, 1 }
   0xe   : > { %217 = sbr.rel (%p214_p9) target bundleno = 531 (0x213), region = 36  ;;  %p254_p11 = scmp.lt.s32.totalorder (!%p214_p9), %s1016_s30, 3 }
   0xf   : > { %s1167_s11 = smov (!%p214_p9), 127   ;;  %s1168_s16 = smov (!%p214_p9), 126  }
  0x10   : > { %s1169_s25 = smov (!%p214_p9), 112   ;;  %s1170_s26 = smov (!%p214_p9), 111  }
  0x11   : > { %s1172_s8 = smov (!%p214_p9), 96   ;;  %s1173_s9 = smov (!%p214_p9), 95  }
  0x12   : > { %s1055_s23 = sshll.u32 (!%p214_p9), %s1227_s22, 7 }
  0x13   : > { %s1257_s6 = scalar_select %p259_p10, %s1227_s22, 1  ;;  %v1166_v1 = vmov 0   ;;  %vm302_vm0 = vcmask 1041408   ;;  %v285_v5 = vld [vmem:[%s1380_s2] sm:$0xf]  ;;  %vm298_vm1 = vcmask 31744  }
  0x14   : > { %s1391_s30 = smov (!%p254_p11, %s1016_s30), 3  ;;  %341 = vmatprep.mubr.bf16.mxu0 %v1166_v1  ;;  %391 = vmatprep.mubr.bf16.mxu1 %v1166_v1  ;;  %vm295_vm2 = vcmask 1039360   ;;  %vm408_vm3 = vcmask 1031168   ;;  %v1022_v14 = vld [vmem:[%s1380_s2 + $0x4] sm:$0xf]  ;;  %vm471_vm4 = vcmask 916480  }
  0x15   : > { %s1018_s7 = sshll.u32 %s1257_s6, 1  ;;  %s1017_s12 = sshll.u32 %s1391_s30, 1  ;;  %v1027_v23 = vld [vmem:[%s1380_s2 + $0x8] sm:$0xf]  ;;  %vm534_vm5 = vcmask 908288   ;;  %vm597_vm6 = vcmask 900096  }
  0x16   : > { %s262_s10 = scalar_lea.vmem %s1379_s1, %s1018_s7  ;;  %s257_s15 = scalar_lea.vmem %s1378_s0, %s1017_s12  ;;  %v1030_v28 = vld [vmem:[%s1380_s2 + $0xc] sm:$0xf]  ;;  %v1033_v34 = vld [vmem:[%s1380_s2 + $0x10] sm:$0xf]  ;;  %vm660_vm7 = vcmask 785408   ;;  %vm723_vm8 = vcmask 777216  }
  0x17   : > { %v275_v0 = vld [vmem:[%s262_s10] sm:$0x3]  ;;  %s1171_s7 = smov 110   ;;  %s1174_s10 = smov 94   ;;  %v1036_v42 = vld [vmem:[%s1380_s2 + $0x14] sm:$0xf] }
  0x18   : > { %293 = vrot.lane.b32.xlu1 %v275_v0, %s1167_s11  ;;  %v1021_v2 = vld.sshfl [vmem:[%s257_s15] sm:$0x33 pattern:$0x76325410]  ;;  %v1039_v48 = vld [vmem:[%s1380_s2 + $0x18] sm:$0xf]  ;;  %s266_s15 = scalar_lea.vmem %s1381_s3, %s1391_s30 }
  0x19   : > { %289 = vrot.lane.b32.xlu0 %v1021_v2, %s1167_s11  ;;  %v284_v3 = vcombine.high %v1021_v2, %v1021_v2  ;;  %v354_v4 = vsel %vm302_vm0, %v1021_v2, 0  ;;  %vm786_vm9 = vcmask 769024   ;;  %v1042_v56 = vld [vmem:[%s1380_s2 + $0x1c] sm:$0xf]  ;;  %v1045_v61 = vld [vmem:[%s1380_s2 + $0x20] sm:$0xf] }
  0x1a   : > { %s244_s30 = sand.u32 1, %s1156_s19  }
  0x1b   : > { %1025 = vmatprep.subr.msk.bf16.mxu1 %vm302_vm0, %v284_v3 }
  0x1c   : > { %406 = vrot.lane.b32.xlu1 %v275_v0, %s1168_s16  ;;  %374 = vmatpush1.bf16.msra.mxu1 %v354_v4 }
  0x1d   : > { %291 = vrot.lane.b32.xlu0 %v284_v3, %s1167_s11  ;;  %s1175_s11 = smov [#allocation2]  }
  0x1e   : > { %s1108_s12 = sshll.u32 %s1175_s11, 4  ;;  %s1109_s12 = int_to_ptr.vmem [resolvable:$false] %s1108_s12 }
  0x1f   : > { %1026 = vmatmul.mubr.msk.bf16.vlgmr.msra.gmra.mxu1 %vm298_vm1, %v285_v5  ;;  %s1110_s13 = scalar_lea.vmem %s1109_s12, 256 }
  0x20   : > { %402 = vrot.lane.b32.xlu1 %v1021_v2, %s1168_s16  ;;  %515 = vmatprep.mubr.bf16.mxu1 %v1166_v1 }
  0x21   : > { %404 = vrot.lane.b32.xlu0 %v284_v3, %s1168_s16  ;;  %s1015_s16 = sshll.u32 %s244_s30, 3 }
  0x22   : > { %s246_s17 = scalar_lea.vmem [#allocation2], %s1015_s16 }
  0x24   : > { %467 = vrot.lane.b32.xlu1 %v284_v3, %s1169_s25 }
  0x25   : > { %465 = vrot.lane.b32.xlu0 %v1021_v2, %s1169_s25 }
  0x28   : > { %528 = vrot.lane.b32.xlu1 %v1021_v2, %s1170_s26 }
  0x29   : > { %469 = vrot.lane.b32.xlu0 %v275_v0, %s1169_s25  ;;  %s904_s25 = sshll.u32 %s246_s17, 4  ;;  %s905_s25 = int_to_ptr.vmem [resolvable:$true] %s904_s25 }
  0x2a   : > { %p1111_p1 = scmp.lt.s32.totalorder %s905_s25, %s1109_s12 }
  0x2c   : > { %532 = vrot.lane.b32.xlu1 %v275_v0, %s1170_s26 }
  0x2d   : > { %530 = vrot.lane.b32.xlu0 %v284_v3, %s1170_s26 }
  0x30   : > { %593 = vrot.lane.b32.xlu1 %v284_v3, %s1171_s7 }
  0x31   : > { %591 = vrot.lane.b32.xlu0 %v1021_v2, %s1171_s7 }
  0x34   : > { %654 = vrot.lane.b32.xlu1 %v1021_v2, %s1172_s8 }
  0x35   : > { %595 = vrot.lane.b32.xlu0 %v275_v0, %s1171_s7 }
  0x38   : > { %658 = vrot.lane.b32.xlu1 %v275_v0, %s1172_s8 }
  0x39   : > { %656 = vrot.lane.b32.xlu0 %v284_v3, %s1172_s8  ;;  %s902_s8 = scalar_lea.hbm %s1382_s4, %s1055_s23 }
  0x3c   : > { %719 = vrot.lane.b32.xlu1 %v284_v3, %s1173_s9 }
  0x3d   : > { %717 = vrot.lane.b32.xlu0 %v1021_v2, %s1173_s9 }
  0x40   : > { %780 = vrot.lane.b32.xlu1 %v1021_v2, %s1174_s10 }
  0x41   : > { %721 = vrot.lane.b32.xlu0 %v275_v0, %s1173_s9  ;;  %s886_s9 = scalar_lea.sflag [#allocation3], %s244_s30 }
  0x44   : > { %784 = vrot.lane.b32.xlu1 %v275_v0, %s1174_s10 }
  0x45   : > { %782 = vrot.lane.b32.xlu0 %v284_v3, %s1174_s10  ;;  %s1104_s10 = scalar_lea.vmem %s905_s25, 128 }
  0x46   : > { %p1105_p12 = scmp.ne.s32.totalorder %s905_s25, %s1104_s10  ;;  %p1112_p2 = scmp.lt.s32.totalorder %s1110_s13, %s1104_s10 }
  0x48   : > { %p1106_p13 = pnand %p1105_p12, %p1244_p5  ;;  %p1113_p3 = por %p1112_p2, %p1111_p1 }
  0x4a   : > { %p1107_p0 = pneg %p1106_p13 }
  0x4c   : > { %p1114_p4 = pnand %p1113_p3, %p1107_p0 }
  0x8a   : > { %v294_v6 = vpop.permute.xlu1 %293 }
  0x8b   : > { %v290_v7 = vpop.permute.xlu0 %289 }
  0x8e   : > { %v407_v8 = vpop.permute.xlu1 %406 }
  0x8f   : > { %v292_v9 = vpop.permute.xlu0 %291 }
  0x90   : > { %v297_v11 = vsel %vm295_vm2, %v292_v9, %v294_v6  ;;  %v296_v12 = vsel %vm295_vm2, %v290_v7, %v292_v9 }
  0x91   : > { %1023 = vmatprep.subr.msk.bf16.mxu0 %vm302_vm0, %v297_v11  ;;  %v304_v13 = vsel %vm302_vm0, %v296_v12, 0 }
  0x92   : > { %v403_v10 = vpop.permute.xlu1 %402  ;;  %324 = vmatpush1.bf16.msra.mxu0 %v304_v13 }
  0x93   : > { %v405_v15 = vpop.permute.xlu0 %404 }
  0x94   : > { %v409_v17 = vsel %vm408_vm3, %v403_v10, %v405_v15  ;;  %v410_v18 = vsel %vm408_vm3, %v405_v15, %v407_v8 }
  0x95   : > { %v415_v19 = vsel %vm302_vm0, %v409_v17, 0  ;;  %1028 = vmatprep.subr.msk.bf16.mxu0 %vm302_vm0, %v410_v18  ;;  %1024 = vmatmul.mubr.msk.bf16.vlgmr.msra.gmra.mxu0 %vm298_vm1, %v1022_v14 }
  0x96   : > { %v468_v16 = vpop.permute.xlu1 %467  ;;  %435 = vmatpush1.bf16.msra.mxu0 %v415_v19  ;;  %452 = vmatprep.mubr.bf16.mxu0 %v1166_v1  ;;  %v853_v19 = vlaneseq }
  0x97   : > { %v466_v20 = vpop.permute.xlu0 %465 }
  0x98   : > { %v472_v22 = vsel %vm471_vm4, %v466_v20, %v468_v16 }
  0x99   : > { %v478_v27 = vsel %vm302_vm0, %v472_v22, 0 }
  0x9a   : > { %v529_v21 = vpop.permute.xlu1 %528 }
  0x9b   : > { %v470_v24 = vpop.permute.xlu0 %469 }
  0x9c   : > { %v473_v26 = vsel %vm471_vm4, %v468_v16, %v470_v24  ;;  %v854_v24 = vshrl.u32 %v853_v19, 7 }
  0x9d   : > { %1031 = vmatprep.subr.msk.bf16.mxu1 %vm302_vm0, %v473_v26  ;;  %1029 = vmatmul.mubr.msk.bf16.vlgmr.msra.gmra.mxu0 %vm298_vm1, %v1027_v23 }
  0x9e   : > { %v533_v25 = vpop.permute.xlu1 %532  ;;  %498 = vmatpush1.bf16.msra.mxu1 %v478_v27  ;;  %578 = vmatprep.mubr.bf16.mxu0 %v1166_v1  ;;  %v850_v27 = vld [vmem:[%s266_s15] sm:$0x3] }
  0x9f   : > { %v531_v29 = vpop.permute.xlu0 %530 }
  0xa0   : > { %v535_v31 = vsel %vm534_vm5, %v529_v21, %v531_v29  ;;  %v536_v32 = vsel %vm534_vm5, %v531_v29, %v533_v25 }
  0xa1   : > { %v541_v33 = vsel %vm302_vm0, %v535_v31, 0  ;;  %1034 = vmatprep.subr.msk.bf16.mxu0 %vm302_vm0, %v536_v32  ;;  %1032 = vmatmul.mubr.msk.bf16.vlgmr.msra.gmra.mxu1 %vm298_vm1, %v1030_v28  ;;  %v851_v32 = vunpack.c.l.bf16 %v850_v27 }
  0xa2   : > { %v594_v30 = vpop.permute.xlu1 %593  ;;  %561 = vmatpush1.bf16.msra.mxu0 %v541_v33  ;;  %641 = vmatprep.mubr.bf16.mxu1 %v1166_v1  ;;  %v855_v33 = vsub.s32 0, %v854_v24 }
  0xa3   : > { %v592_v35 = vpop.permute.xlu0 %591 }
  0xa4   : > { %v598_v37 = vsel %vm597_vm6, %v592_v35, %v594_v30 }
  0xa5   : > { %1035 = vmatmul.mubr.msk.bf16.vlgmr.msra.gmra.mxu0 %vm298_vm1, %v1033_v34  ;;  %v604_v41 = vsel %vm302_vm0, %v598_v37, 0  ;;  %v859_v37 = vsub.s32 2, %v854_v24 }
  0xa6   : > { %v655_v36 = vpop.permute.xlu1 %654  ;;  %704 = vmatprep.mubr.bf16.mxu0 %v1166_v1 }
  0xa7   : > { %v596_v38 = vpop.permute.xlu0 %595 }
  0xa8   : > { %v599_v40 = vsel %vm597_vm6, %v594_v30, %v596_v38 }
  0xa9   : > { %1037 = vmatprep.subr.msk.bf16.mxu1 %vm302_vm0, %v599_v40 }
  0xaa   : > { %v659_v39 = vpop.permute.xlu1 %658  ;;  %624 = vmatpush1.bf16.msra.mxu1 %v604_v41  ;;  %v856_v41 = vrot.slane %v851_v32, %v855_v33 }
  0xab   : > { %v657_v43 = vpop.permute.xlu0 %656 }
  0xac   : > { %v661_v45 = vsel %vm660_vm7, %v655_v36, %v657_v43  ;;  %v662_v46 = vsel %vm660_vm7, %v657_v43, %v659_v39 }
  0xad   : > { %v667_v47 = vsel %vm302_vm0, %v661_v45, 0  ;;  %1038 = vmatmul.mubr.msk.bf16.vlgmr.msra.gmra.mxu1 %vm298_vm1, %v1036_v42  ;;  %1040 = vmatprep.subr.msk.bf16.mxu0 %vm302_vm0, %v662_v46  ;;  %v860_v45 = vrot.slane %v851_v32, %v859_v37 }
  0xae   : > { %v720_v44 = vpop.permute.xlu1 %719  ;;  %687 = vmatpush1.bf16.msra.mxu0 %v667_v47  ;;  %767 = vmatprep.mubr.bf16.mxu1 %v1166_v1 }
  0xaf   : > { %v718_v49 = vpop.permute.xlu0 %717 }
  0xb0   : > { %v724_v51 = vsel %vm723_vm8, %v718_v49, %v720_v44  ;;  %v866_v49 = vrot.slane %v856_v41, %v855_v33 }
  0xb1   : > { %1041 = vmatmul.mubr.msk.bf16.vlgmr.msra.gmra.mxu0 %vm298_vm1, %v1039_v48  ;;  %v730_v54 = vsel %vm302_vm0, %v724_v51, 0 }
  0xb2   : > { %v781_v50 = vpop.permute.xlu1 %780  ;;  %830 = vmatprep.mubr.bf16.mxu0 %v1166_v1 }
  0xb3   : > { %v722_v52 = vpop.permute.xlu0 %721 }
  0xb4   : > { %v725_v53 = vsel %vm723_vm8, %v720_v44, %v722_v52 }
  0xb5   : > { %1043 = vmatprep.subr.msk.bf16.mxu1 %vm302_vm0, %v725_v53 }
  0xb6   : > { %v785_v55 = vpop.permute.xlu1 %784  ;;  %750 = vmatpush1.bf16.msra.mxu1 %v730_v54  ;;  %v870_v54 = vrot.slane %v860_v45, %v855_v33 }
  0xb7   : > { %v783_v57 = vpop.permute.xlu0 %782 }
  0xb8   : > { %v787_v58 = vsel %vm786_vm9, %v781_v50, %v783_v57  ;;  %v788_v59 = vsel %vm786_vm9, %v783_v57, %v785_v55 }
  0xb9   : > { %v793_v60 = vsel %vm302_vm0, %v787_v58, 0  ;;  %1044 = vmatmul.mubr.msk.bf16.vlgmr.msra.gmra.mxu1 %vm298_vm1, %v1042_v56  ;;  %1046 = vmatprep.subr.msk.bf16.mxu0 %vm302_vm0, %v788_v59 }
  0xba   : > { %813 = vmatpush1.bf16.msra.mxu0 %v793_v60 }
  0xbd   : > { %1047 = vmatmul.mubr.msk.bf16.vlgmr.msra.gmra.mxu0 %vm298_vm1, %v1045_v61 }
  0xdf   : > { %v393_v62 = vpop.f32.mrf.mxu1 }
  0xe1   : > { %v395_v63 = vpop.f32.mrf.mxu1 }
  0xe3   : > { %v397_v0 = vpop.f32.mrf.mxu1 }
  0xe5   : > { %v398_v1 = vpop.f32.mrf.mxu1 }
 0x155   : > { %v343_v2 = vpop.f32.mrf.mxu0 }
 0x156   : > { %v394_v18 = vadd.f32 %v393_v62, %v343_v2 }
 0x157   : > { %v345_v3 = vpop.f32.mrf.mxu0 }
 0x158   : > { %v396_v22 = vadd.f32 %v395_v63, %v345_v3 }
 0x159   : > { %v347_v4 = vpop.f32.mrf.mxu0 }
 0x15b   : > { %v348_v5 = vpop.f32.mrf.mxu0 }
 0x15d   : > { %v454_v6 = vpop.f32.mrf.mxu0 }
 0x15e   : > { %v461_v23 = vadd.f32 %v454_v6, %v394_v18 }
 0x15f   : > { %v456_v7 = vpop.f32.mrf.mxu0 }
 0x160   : > { %v462_v30 = vadd.f32 %v456_v7, %v396_v22 }
 0x161   : > { %v458_v8 = vpop.f32.mrf.mxu0  ;;  %v517_v9 = vpop.f32.mrf.mxu1 }
 0x162   : > { %v524_v31 = vadd.f32 %v517_v9, %v461_v23 }
 0x163   : > { %v459_v10 = vpop.f32.mrf.mxu0  ;;  %v519_v11 = vpop.f32.mrf.mxu1 }
 0x164   : > { %v525_v35 = vadd.f32 %v519_v11, %v462_v30 }
 0x165   : > { %v580_v12 = vpop.f32.mrf.mxu0  ;;  %v521_v13 = vpop.f32.mrf.mxu1 }
 0x166   : > { %v587_v36 = vadd.f32 %v580_v12, %v524_v31 }
 0x167   : > { %v582_v14 = vpop.f32.mrf.mxu0  ;;  %v522_v15 = vpop.f32.mrf.mxu1 }
 0x168   : > { %v588_v39 = vadd.f32 %v582_v14, %v525_v35 }
 0x169   : > { %v584_v16 = vpop.f32.mrf.mxu0 }
 0x16b   : > { %v585_v17 = vpop.f32.mrf.mxu0 }
 0x16d   : > { %v643_v20 = vpop.f32.mrf.mxu1 }
 0x16e   : > { %v650_v40 = vadd.f32 %v643_v20, %v587_v36 }
 0x16f   : > { %v645_v21 = vpop.f32.mrf.mxu1 }
 0x170   : > { %v651_v43 = vadd.f32 %v645_v21, %v588_v39 }
 0x171   : > { %v706_v25 = vpop.f32.mrf.mxu0  ;;  %v647_v26 = vpop.f32.mrf.mxu1 }
 0x172   : > { %v713_v44 = vadd.f32 %v706_v25, %v650_v40 }
 0x173   : > { %v708_v28 = vpop.f32.mrf.mxu0  ;;  %v648_v29 = vpop.f32.mrf.mxu1 }
 0x174   : > { %v714_v47 = vadd.f32 %v708_v28, %v651_v43 }
 0x175   : > { %v710_v34 = vpop.f32.mrf.mxu0 }
 0x177   : > { %v711_v38 = vpop.f32.mrf.mxu0 }
 0x179   : > { %v769_v42 = vpop.f32.mrf.mxu1 }
 0x17a   : > { %v776_v48 = vadd.f32 %v769_v42, %v713_v44 }
 0x17b   : > { %v771_v46 = vpop.f32.mrf.mxu1 }
 0x17c   : > { %v777_v52 = vadd.f32 %v771_v46, %v714_v47 }
 0x17d   : > { %v832_v50 = vpop.f32.mrf.mxu0  ;;  %v773_v51 = vpop.f32.mrf.mxu1 }
 0x17e   : > { %v839_v53 = vadd.f32 %v832_v50, %v776_v48 }
 0x17f   : > { %v834_v55 = vpop.f32.mrf.mxu0  ;;  %v774_v56 = vpop.f32.mrf.mxu1 }
 0x180   : > { %v840_v57 = vadd.f32 %v834_v55, %v777_v52  ;;  %v871_v58 = vmul.f32 %v866_v49, %v839_v53 }
 0x181   : > { %v836_v59 = vpop.f32.mrf.mxu0 }
 0x182   : > { %v1054_v60 = vpack.c.bf16 %v840_v57, %v839_v53  ;;  %v872_v61 = vmul.f32 %v870_v54, %v840_v57  ;;  %v878_v0 = vmul.f32 %v871_v58, %v839_v53 }
 0x183   : > { %v837_v62 = vpop.f32.mrf.mxu0 }
 0x184   : > { %v873_v63 = vadd.f32 %v872_v61, %v871_v58  ;;  %v879_v1 = vmul.f32 %v872_v61, %v840_v57  ;;  %849 = vst [vmem:[%s246_s17] sm:$0xff] %v1054_v60 }
 0x186   : > { %874 = vadd.xlane.f32.xlu0 %v873_v63  ;;  %v880_v2 = vadd.f32 %v879_v1, %v878_v0 }
 0x188   : > { %881 = vadd.xlane.f32.xlu1 %v880_v2 }
 0x189   : > { %1117 = shalt.err (!%p1114_p4)
}
 0x18a   : > { %s1118_s22 = scalar_lea.hbm %s902_s8, 128  ;;  %s1122_s30 = scalar_lea.hbm %s1382_s4, 256 }
 0x18b   : > { %p1119_p7 = scmp.ne.s32.totalorder %s902_s8, %s1118_s22  ;;  %p1123_p10 = scmp.lt.s32.totalorder %s902_s8, %s1382_s4 }
 0x18c   : > { %p1124_p11 = scmp.lt.s32.totalorder %s1122_s30, %s1118_s22 }
 0x18d   : > { %p1120_p8 = pnand %p1119_p7, %p1244_p5 }
 0x18e   : > { %p1125_p12 = por %p1124_p11, %p1123_p10 }
 0x18f   : > { %p1121_p9 = pneg %p1120_p8 }
 0x191   : > { %p1126_p13 = pnand %p1125_p12, %p1121_p9 }
 0x193   : > { %1129 = shalt.err (!%p1126_p13)
}
 0x194   : > { %1056 = dma.vmem_to_hbm [thread:$0]  (%p1244_p5), %s905_s25, 128, %s902_s8, %s886_s9   ;;  %vm876_vm10 = vcmask 7168   ;;  %vm883_vm11 = vcmask 15368  }
 0x195   : > { %s1020_s23 = sshll.u32 %s1257_s6, 3 }
 0x196   : > { %s272_s10 = scalar_lea.vmem %s1383_s5, %s1020_s23 }
 0x20f   : > { %v875_v3 = vpop.xlane.xlu0 %874 }
 0x210   : > { %877 = vst.msk [vmem:[%s272_s10] sm:$0xff] %vm876_vm10, %v875_v3 }
 0x211   : > { %v882_v4 = vpop.xlane.xlu1 %881 }
 0x212   : > { %884 = vst.msk [vmem:[%s272_s10] sm:$0xff] %vm883_vm11, %v882_v4 }
 0x213 PF: > { %p1062_p0 = scmp.ge.s32.totalorder %s1164_s21, 2  ;;  %s919_s11 = sand.u32 1, %s1152_s18  }
 0x214   : > { %s920_s28 = scalar_lea.sflag [#allocation3], %s919_s11 }
 0x215   : > { %p1059_p1 = pnand %p1062_p0, %p1248_p6 }
 0x217   : > { %p1060_p5 = pneg %p1059_p1 }
 0x219   : > { %1147 = dma.done.wait (%p1060_p5), %s920_s28, 128  }
 0x21a   : > { %1149 = vsyncadd (%p1060_p5), %s920_s28, 4294967168  ;;  %p16_p2 = scmp.ge.s32.totalorder %s1231_s24, 4   ;;  %s1386_s18 = smov %s1156_s19 }
 0x21b   : > { %s1387_s19 = smov %s1160_s20  ;;  %s1388_s20 = smov %s1242_s27 }
 0x21c   : > { %s1389_s21 = smov %s1231_s24  ;;  %18 = sbr.rel (!%p16_p2) target bundleno = 3 (0x3), region = 97 }
 0x221   :  { %932 = vsyncpa [#allocation3], 1 }
 0x222   :  { %934 = vsyncpa [#allocation3 + $0x1], 1 }

</bundles_post_ra>
